<compile_context>
chip_gen: v7x
topology: tpu7x:2x2x1
jax: 0.10.0
libtpu: 0.0.40
codegen_flags: <defaults>
</compile_context>

<pallas_src>
import jax
import jax.numpy as jnp
from jax.experimental import pallas as pl
from jax.experimental.pallas import tpu as pltpu

_LANE = 128      # vreg lane width
_SUBLANE = 16    # sublane multiple covering bf16 packing


def _round_up(x, m):
    return (x + m - 1) // m * m


def _vmem_budget_bytes():
    """~75% of physical VMEM: ~48 MiB on v7x (64 MiB), ~96 MiB on v5e/v6e (128 MiB)."""
    try:
        cap = pltpu.get_tpu_info().vmem_capacity_bytes
    except Exception:
        cap = 64 * 1024 * 1024  # conservative (v7x-sized) default
    return max(32 * 1024 * 1024, min(int(cap) * 3 // 4, 112 * 1024 * 1024))


def _pick_tile_n(Hp, target):
    """Largest 128-multiple divisor of Hp <= target, preferring even tile counts
    (ideally >= 4 tiles) so v7x's two TensorCores split the weight stream evenly
    and each core still has >= 2 tiles to pipeline."""
    cands = [t for t in range(_LANE, Hp + 1, _LANE)
             if Hp % t == 0 and t <= max(target, _LANE)]
    if not cands:
        return Hp

    def tier(t):
        n = Hp // t
        if n % 2 == 0 and n >= 4:
            return 2
        if n % 2 == 0:
            return 1
        return 0

    best = max(tier(t) for t in cands)
    return max(t for t in cands if tier(t) == best)


def pooler_kernel(x_ref, w_ref, b_ref, o_ref):
    # x_ref: (TB, Hp)  first-token slab tile (compute dtype, e.g. bf16)
    # w_ref: (Hp, TN)  weight tile, already in (H_in, H_out) order -> x @ w
    # b_ref: (1,  TN)  f32 bias tile
    # o_ref: (TB, TN)  output tile
    y = jnp.dot(x_ref[...], w_ref[...], preferred_element_type=jnp.float32)
    o_ref[...] = jnp.tanh(y + b_ref[...]).astype(o_ref.dtype)


def pooler_prepare_params(weight, bias, *, compute_dtype=jnp.bfloat16):
    """One-time parameter prep, hoisted out of the per-call path.

    weight: (H_out, H_in) PyTorch nn.Linear layout; bias: (H_out,).
    Returns (w_p, b_p): weight transposed to (H_in, H_out), padded to lane
    multiples, cast to compute_dtype; bias padded, kept in f32.
    Call once and reuse across forwards.
    """
    H_out, H_in = weight.shape
    assert H_out == H_in, "Pooler dense layer is square (Linear(size, size))"
    Hp = _round_up(H_in, _LANE)
    w_t = weight.T.astype(compute_dtype)            # (H_in, H_out)
    b_f = bias.astype(jnp.float32)
    if Hp == H_in:
        return w_t, b_f.reshape(1, Hp)
    w_p = jnp.zeros((Hp, Hp), compute_dtype).at[:H_in, :H_out].set(w_t)
    b_p = jnp.zeros((1, Hp), jnp.float32).at[0, :H_out].set(b_f)
    return w_p, b_p


def pooler_apply(hidden_states, w_p, b_p, *, out_dtype=None,
                 tile_n=None, tile_b=512, force_pallas=False):
    """hidden_states: (B, S, H); (w_p, b_p) from pooler_prepare_params."""
    B, S, H = hidden_states.shape
    out_dtype = out_dtype or hidden_states.dtype
    Hp = w_p.shape[0]
    compute_dtype = w_p.dtype
    itemsize = jnp.dtype(compute_dtype).itemsize
    assert Hp == _round_up(H, _LANE), "prepared weight does not match hidden size"

    # First-token selection in the wrapper: cheap, contiguous XLA slice.
    x2d = hidden_states[:, 0, :]                                  # (B, H)

    # Small-problem fallback: padding a tiny layer to 128 lanes would multiply
    # the (dominant) weight traffic; plain XLA is strictly faster there.
    if not force_pallas and H <= 256:
        y = jnp.dot(x2d.astype(compute_dtype), w_p[:H, :H],
                    preferred_element_type=jnp.float32) + b_p[0, :H]
        return jnp.tanh(y).astype(out_dtype)

    vmem_budget = _vmem_budget_bytes()

    # N-tile: bigger tiles amortize the ~0.35us/step pipeline overhead on
    # v5e/v6e (128 MiB VMEM); on v7x (64 MiB) the smaller budget caps them.
    if tile_n is None:
        tile_n = 1024 if vmem_budget >= 80 * 1024 * 1024 else 512
    tn = _pick_tile_n(Hp, tile_n)
    n_tiles = Hp // tn

    # B-tiling: bound the x slab in VMEM for large batches (v7x cliff).  B is
    # the inner grid axis and the weight index_map ignores it, so each weight
    # tile is still fetched exactly once per N tile.
    Bp_full = _round_up(max(B, 1), _SUBLANE)
    if Bp_full * Hp * itemsize > 8 * 1024 * 1024:
        tb = _round_up(min(tile_b, Bp_full), _SUBLANE)
        Bp = _round_up(Bp_full, tb)
    else:
        Bp = Bp_full
        tb = Bp
    b_tiles = Bp // tb

    # Skip the x padding copy entirely when already aligned (common BERT case).
    x_c = x2d.astype(compute_dtype)
    if (Bp, Hp) == (B, H):
        x_p = x_c
    else:
        x_p = jnp.zeros((Bp, Hp), compute_dtype).at[:B, :H].set(x_c)

    if b_tiles == 1:
        grid = (n_tiles,)
        in_specs = [
            pl.BlockSpec((Bp, Hp), lambda j: (0, 0)),   # x: single resident block
            pl.BlockSpec((Hp, tn), lambda j: (0, j)),   # weight: N-tiled stream
            pl.BlockSpec((1, tn), lambda j: (0, j)),    # bias: matching N-tile
        ]
        out_spec = pl.BlockSpec((Bp, tn), lambda j: (0, j))
        dim_sem = ("parallel",)                         # split N across v7x's 2 TCs
    else:
        grid = (n_tiles, b_tiles)                       # B varies fastest (inner)
        in_specs = [
            pl.BlockSpec((tb, Hp), lambda j, b: (b, 0)),
            pl.BlockSpec((Hp, tn), lambda j, b: (0, j)),  # ignores b -> resident
            pl.BlockSpec((1, tn), lambda j, b: (0, j)),
        ]
        out_spec = pl.BlockSpec((tb, tn), lambda j, b: (b, j))
        dim_sem = ("parallel", "arbitrary")

    cost = pl.CostEstimate(
        flops=2 * Bp * Hp * Hp,
        transcendentals=Bp * Hp,
        bytes_accessed=(Bp * Hp + Hp * Hp) * itemsize
        + Hp * 4
        + Bp * Hp * jnp.dtype(out_dtype).itemsize,
    )

    out_p = pl.pallas_call(
        pooler_kernel,
        out_shape=jax.ShapeDtypeStruct((Bp, Hp), out_dtype),
        grid_spec=pl.GridSpec(grid=grid, in_specs=in_specs, out_specs=out_spec),
        compiler_params=pltpu.CompilerParams(
            dimension_semantics=dim_sem,
            vmem_limit_bytes=vmem_budget,
        ),
        cost_estimate=cost,
    )(x_p, w_p, b_p)

    if (Bp, Hp) == (B, H):
        return out_p
    return out_p[:B, :H]


def pooler_forward(hidden_states, weight, bias, *, compute_dtype=jnp.bfloat16, **kwargs):
    """One-shot convenience.  For repeated calls, hoist pooler_prepare_params
    out of the call path (its pad/transpose/cast would otherwise re-stream the
    HxH weight every forward)."""
    w_p, b_p = pooler_prepare_params(weight, bias, compute_dtype=compute_dtype)
    return pooler_apply(hidden_states, w_p, b_p, **kwargs)


if __name__ == "__main__":
    key = jax.random.PRNGKey(0)
    k_x, k_w, k_b, k_x2 = jax.random.split(key, 4)

    # --- Case 1: module-consistent small shapes (batch=2, seq=8, hidden=32).
    # Auto path takes the XLA fallback (H <= 256); force_pallas=True also runs
    # the Pallas kernel on the padded slab so the kernel itself is exercised.
    B, S, H = 2, 8, 32
    hidden_states = jax.random.normal(k_x, (B, S, H), dtype=jnp.float32)
    weight = jax.random.normal(k_w, (H, H), dtype=jnp.float32) * 0.02   # (out, in)
    bias = jax.random.normal(k_b, (H,), dtype=jnp.float32) * 0.02

    w_p, b_p = pooler_prepare_params(weight, bias)     # one-time, hoisted prep

    out_fallback = jax.block_until_ready(pooler_apply(hidden_states, w_p, b_p))
    out_pallas = jax.block_until_ready(
        pooler_apply(hidden_states, w_p, b_p, force_pallas=True))
    assert out_fallback.shape == (B, H) and out_pallas.shape == (B, H)

    # Reference 1: same bf16 matmul inputs / f32 accumulation as the kernel.
    x_bf = hidden_states[:, 0].astype(jnp.bfloat16)
    ref_bf = jnp.tanh(jnp.dot(x_bf, weight.T.astype(jnp.bfloat16),
                              preferred_element_type=jnp.float32) + bias)
    # Reference 2: full-f32 PyTorch math, at bf16-input tolerance.
    ref_f32 = jnp.tanh(hidden_states[:, 0] @ weight.T + bias)
    for out in (out_fallback, out_pallas):
        assert jnp.allclose(out, ref_bf.astype(out.dtype), atol=1e-4, rtol=1e-4)
        assert jnp.allclose(out, ref_f32, atol=2e-2, rtol=2e-2)

    # --- Case 2: lane-aligned hidden size (H=256) exercises the no-padding,
    # even-tile-count Pallas path.
    B2, S2, H2 = 4, 8, 256
    hs2 = jax.random.normal(k_x2, (B2, S2, H2), dtype=jnp.float32)
    w2 = jax.random.normal(k_w, (H2, H2), dtype=jnp.float32) * 0.02
    b2 = jax.random.normal(k_b, (H2,), dtype=jnp.float32) * 0.02
    w2_p, b2_p = pooler_prepare_params(w2, b2)
    out2 = jax.block_until_ready(pooler_apply(hs2, w2_p, b2_p, force_pallas=True))
    ref2 = jnp.tanh(hs2[:, 0] @ w2.T + b2)
    assert out2.shape == (B2, H2)
    assert jnp.allclose(out2, ref2, atol=2e-2, rtol=2e-2)

    print("KERNEL_OK")
</pallas_src>

<mosaic_0001>
module attributes {stable_mosaic.version = 11 : i64} {
  func.func @pooler_kernel(%arg0: i32, %arg1: memref<16x128xbf16, #tpu.memory_space<vmem>>, %arg2: memref<128x128xbf16, #tpu.memory_space<vmem>>, %arg3: memref<1x128xf32, #tpu.memory_space<vmem>>, %arg4: memref<16x128xf32, #tpu.memory_space<vmem>>) attributes {dimension_semantics = [#tpu.dimension_semantics<parallel>], iteration_bounds = array<i64: 1>, scalar_prefetch = 0 : i64, scratch_operands = 0 : i64, tpu.core_type = #tpu.core_type<tc>, window_params = [{pipeline_mode = #tpu.pipeline_mode<synchronous>, transform_indices = @transform_0, window_bounds = array<i64: 16, 128>}, {transform_indices = @transform_1, window_bounds = array<i64: 128, 128>}, {transform_indices = @transform_2, window_bounds = array<i64: 1, 128>}, {transform_indices = @transform_3, window_bounds = array<i64: 16, 128>}]} {
    %c0 = arith.constant 0 : index
    %c0_0 = arith.constant 0 : index
    %0 = vector.load %arg1[%c0, %c0_0] : memref<16x128xbf16, #tpu.memory_space<vmem>>, vector<16x128xbf16>
    %c0_1 = arith.constant 0 : index
    %c0_2 = arith.constant 0 : index
    %1 = vector.load %arg2[%c0_1, %c0_2] : memref<128x128xbf16, #tpu.memory_space<vmem>>, vector<128x128xbf16>
    %cst = arith.constant dense<0.000000e+00> : vector<16x128xf32>
    %2 = tpu.matmul %0, %1, %cst {dimension_numbers = #tpu.dot_dimension_numbers<[1], [0], [0], [1], [0, 0, 1, 1], [], []>} : vector<16x128xbf16>, vector<128x128xbf16>, vector<16x128xf32> -> vector<16x128xf32>
    %c0_3 = arith.constant 0 : index
    %c0_4 = arith.constant 0 : index
    %3 = vector.load %arg3[%c0_3, %c0_4] : memref<1x128xf32, #tpu.memory_space<vmem>>, vector<1x128xf32>
    %4 = vector.broadcast %3 : vector<1x128xf32> to vector<16x128xf32>
    %5 = arith.addf %2, %4 : vector<16x128xf32>
    %6 = math.tanh %5 : vector<16x128xf32>
    %c0_5 = arith.constant 0 : index
    %c0_6 = arith.constant 0 : index
    %7 = vector.load %arg4[%c0_5, %c0_6] : memref<16x128xf32, #tpu.memory_space<vmem>>, vector<16x128xf32>
    tpu.vector_store %arg4[%c0_5, %c0_6], %6 {strides = array<i32>} : memref<16x128xf32, #tpu.memory_space<vmem>>, vector<16x128xf32>,
    return
  }
  func.func @transform_0(%arg0: i32) -> (i32, i32) {
    %c0_i32 = arith.constant 0 : i32
    %c0_i32_0 = arith.constant 0 : i32
    %c0_i32_1 = arith.constant 0 : i32
    return %c0_i32, %c0_i32_0 : i32, i32
  }
  func.func @transform_1(%arg0: i32) -> (i32, i32) {
    %c0_i32 = arith.constant 0 : i32
    %c0_i32_0 = arith.constant 0 : i32
    return %c0_i32, %arg0 : i32, i32
  }
  func.func @transform_2(%arg0: i32) -> (i32, i32) {
    %c0_i32 = arith.constant 0 : i32
    %c0_i32_0 = arith.constant 0 : i32
    return %c0_i32, %arg0 : i32, i32
  }
  func.func @transform_3(%arg0: i32) -> (i32, i32) {
    %c0_i32 = arith.constant 0 : i32
    %c0_i32_0 = arith.constant 0 : i32
    return %c0_i32, %arg0 : i32, i32
  }
}

</mosaic_0001>

<bundles_post_ra>
// kernel: tpu_custom_call.1
= control target key start
LH: loop header
LB: loop body
LE: loop exit
PB: predicated region body
PF: predicated region fallthrough
CT: control target
= control target key end

     0   :  { %8 = vsyncpa [#allocation3], 0  ;;  %s387_s0 = inlined_call_operand.hbm [shape: bf16[16,128], index: 0, kind: input, shape index: {}]   ;;  %s388_s1 = inlined_call_operand.hbm [shape: bf16[128,128], index: 1, kind: input, shape index: {}]   ;;  %s389_s2 = inlined_call_operand.vmem [shape: f32[1,128], index: 2, kind: input, shape index: {}]   ;;  %s390_s3 = inlined_call_operand.hbm [shape: f32[16,128], index: 3, kind: output, shape index: {}]  }
   0x1   :  { %9 = vsyncpa [#allocation6], 0 }
   0x2   :  { %10 = vsyncpa [#allocation4], 0  ;;  %s319_s12 = smov [#allocation2]   ;;  %s247_s16 = scalar_lea.hbm %s387_s0, 128 }
   0x3   :  { %s16_s13 = sshll.u32 %s319_s12, 4  ;;  %p248_p0 = scmp.ne.s32.totalorder %s387_s0, %s247_s16  ;;  %s17_s13 = int_to_ptr.vmem [resolvable:$true] %s16_s13 }
   0x4   :  { %p251_p1 = scmp.lt.u32.totalorder %s247_s16, %s387_s0 }
   0x6   :  { %p253_p2 = pnand %p251_p1, %p248_p0 }
   0x8   :  { %256 = shalt.err (!%p253_p2)
}
   0x9   :  { %s257_s21 = scalar_lea.vmem %s17_s13, 128  ;;  %p262_p4 = scmp.lt.s32.totalorder %s17_s13, %s17_s13 }
   0xa   :  { %p258_p3 = scmp.ne.s32.totalorder %s17_s13, %s257_s21  ;;  %p263_p5 = scmp.lt.s32.totalorder %s257_s21, %s257_s21 }
   0xc   :  { %p264_p6 = por %p263_p5, %p262_p4 }
   0xe   :  { %p265_p7 = pnand %p264_p6, %p258_p3 }
  0x10   :  { %268 = shalt.err (!%p265_p7)
}
  0x11   :  { %s320_s22 = smov 64   ;;  %s321_s23 = smov 4  }
  0x12   :  { %22 = dma.hbm_to_vmem [thread:$0]  %s387_s0, 128, %s17_s13, [#allocation3], %s320_s22, %s320_s22, %s321_s23  }
  0x13   :  { %s322_s26 = smov [#allocation5]   ;;  %s269_s30 = scalar_lea.hbm %s388_s1, 1024 }
  0x14   :  { %s28_s27 = sshll.u32 %s322_s26, 4  ;;  %p270_p8 = scmp.ne.s32.totalorder %s388_s1, %s269_s30  ;;  %s29_s27 = int_to_ptr.vmem [resolvable:$true] %s28_s27 }
  0x15   :  { %p273_p9 = scmp.lt.u32.totalorder %s269_s30, %s388_s1 }
  0x17   :  { %p275_p10 = pnand %p273_p9, %p270_p8 }
  0x19   :  { %278 = shalt.err (!%p275_p10)
}
  0x1a   :  { %s279_s8 = scalar_lea.vmem %s29_s27, 1024  ;;  %p284_p12 = scmp.lt.s32.totalorder %s29_s27, %s29_s27 }
  0x1b   :  { %p280_p11 = scmp.ne.s32.totalorder %s29_s27, %s279_s8  ;;  %p285_p13 = scmp.lt.s32.totalorder %s279_s8, %s279_s8 }
  0x1d   :  { %p286_p0 = por %p285_p13, %p284_p12 }
  0x1f   :  { %p287_p1 = pnand %p286_p0, %p280_p11 }
  0x21   :  { %290 = shalt.err (!%p287_p1)
}
  0x22   :  { %34 = dma.hbm_to_vmem [thread:$0]  %s388_s1, 1024, %s29_s27, [#allocation6], %s320_s22, %s320_s22, %s321_s23  }
  0x23   :  { %313 = dma.done.wait [#allocation3], 128  }
  0x24   :  { %314 = vsyncadd [#allocation3], 4294967168 }
  0x25   :  { %315 = dma.done.wait [#allocation6], 1024  }
  0x26   :  { %316 = vsyncadd [#allocation6], 4294966272  ;;  %v323_v0 = vmov 0.0   ;;  %vm324_vm0 = vmmov 0   ;;  %v234_v1 = vld [vmem:[#allocation5] sm:$0xff]   ;;  %v235_v2 = vld [vmem:[#allocation5 + $0x8] sm:$0xff]  }
  0x27   :  { %205 = vmatprep.subr.bf16.mxu0 %v323_v0  ;;  %221 = vmatprep.mubr.msk.bf16.mxu0 %vm324_vm0, %v323_v0  ;;  %v236_v3 = vld [vmem:[#allocation5 + $0x10] sm:$0xff]   ;;  %v237_v4 = vld [vmem:[#allocation5 + $0x18] sm:$0xff]   ;;  %v238_v5 = vld [vmem:[#allocation5 + $0x20] sm:$0xff]   ;;  %s325_s11 = smov [#allocation7]  }
  0x28   :  { %206 = vmatpush3.bf16.msra.mxu0 %v234_v1  ;;  %v239_v6 = vld [vmem:[#allocation5 + $0x28] sm:$0xff]   ;;  %v240_v7 = vld [vmem:[#allocation5 + $0x30] sm:$0xff]   ;;  %v241_v8 = vld [vmem:[#allocation5 + $0x38] sm:$0xff]   ;;  %s173_s12 = sshll.u32 %s325_s11, 4  ;;  %s174_s12 = int_to_ptr.vmem [resolvable:$true] %s173_s12 }
  0x29   :  { %207 = vmatprep.subr.bf16.mxu0 %v323_v0  ;;  %v242_v9 = vld [vmem:[#allocation2] sm:$0xff]   ;;  %s291_s13 = scalar_lea.vmem %s174_s12, 256  ;;  %p296_p3 = scmp.lt.s32.totalorder %s174_s12, %s174_s12 }
  0x2a   :  { %v186_v10 = vld [vmem:[%s389_s2] ss:$0 sm:$0xff]  ;;  %p292_p2 = scmp.ne.s32.totalorder %s174_s12, %s291_s13  ;;  %p297_p4 = scmp.lt.s32.totalorder %s291_s13, %s291_s13 }
  0x2c   :  { %208 = vmatpush3.bf16.msra.mxu0 %v235_v2  ;;  %p298_p5 = por %p297_p4, %p296_p3 }
  0x2d   :  { %209 = vmatprep.subr.bf16.mxu0 %v323_v0 }
  0x2e   :  { %p299_p6 = pnand %p298_p5, %p292_p2 }
  0x30   :  { %210 = vmatpush3.bf16.msra.mxu0 %v236_v3 }
  0x31   :  { %211 = vmatprep.subr.bf16.mxu0 %v323_v0 }
  0x34   :  { %212 = vmatpush3.bf16.msra.mxu0 %v237_v4 }
  0x35   :  { %213 = vmatprep.subr.bf16.mxu0 %v323_v0 }
  0x38   :  { %214 = vmatpush3.bf16.msra.mxu0 %v238_v5 }
  0x39   :  { %215 = vmatprep.subr.bf16.mxu0 %v323_v0 }
  0x3c   :  { %216 = vmatpush3.bf16.msra.mxu0 %v239_v6 }
  0x3d   :  { %217 = vmatprep.subr.bf16.mxu0 %v323_v0 }
  0x40   :  { %218 = vmatpush3.bf16.msra.mxu0 %v240_v7 }
  0x41   :  { %219 = vmatprep.subr.bf16.mxu0 %v323_v0 }
  0x44   :  { %220 = vmatpush3.bf16.msra.mxu0 %v241_v8 }
  0x47   :  { %222 = vmatmul.mubr.bf16.vlgmr.msra.gmra.mrb[0].mxu0 %v242_v9 }
 0x11a   :  { %v157_v11 = vpop.f32.mrb[0].mxu0 }
 0x11b   :  { %v158_v12 = vadd.f32 %v186_v10, %v157_v11  ;;  %v223_v13 = vpop.f32.mrb[1].mxu0 }
 0x11c   :  { %v160_v14 = vpop.f32.mrb[2].mxu0 }
 0x11d   :  { %243 = vtanh.f32 %v158_v12  ;;  %v161_v15 = vadd.f32 %v186_v10, %v160_v14  ;;  %v224_v16 = vpop.f32.mrb[3].mxu0 }
 0x11f   :  { %245 = vtanh.f32 %v161_v15 }
 0x127   :  { %v244_v17 = vpop.eup %243 }
 0x128   :  { %166 = vst [vmem:[#allocation7] sm:$0xff] %v244_v17 }
 0x129   :  { %v246_v18 = vpop.eup %245 }
 0x12a   :  { %167 = vst [vmem:[#allocation7 + $0x8] sm:$0xff] %v246_v18 }
 0x12b   :  { %302 = shalt.err (!%p299_p6)
}
 0x12c   :  { %s303_s15 = scalar_lea.hbm %s390_s3, 256 }
 0x12d   :  { %p304_p7 = scmp.ne.s32.totalorder %s390_s3, %s303_s15  ;;  %p307_p8 = scmp.lt.u32.totalorder %s303_s15, %s390_s3 }
 0x12f   :  { %p309_p9 = pnand %p307_p8, %p304_p7 }
 0x131   :  { %312 = shalt.err (!%p309_p9)
}
 0x132   :  { %s326_s20 = smov 128   ;;  %s327_s21 = smov 8  }
 0x133   :  { %179 = dma.vmem_to_hbm [thread:$0]  %s174_s12, 256, %s390_s3, [#allocation4], %s326_s20, %s326_s20, %s327_s21  }
 0x134   :  { %317 = dma.done.wait [#allocation4], 256  }
 0x135   :  { %318 = vsyncadd [#allocation4], 4294967040 }
 0x136   :  { %183 = vsyncpa [#allocation3], 1 }
 0x137   :  { %184 = vsyncpa [#allocation6], 1 }
 0x138   :  { %185 = vsyncpa [#allocation4], 1 }

</bundles_post_ra>
